<compile_context>
chip_gen: v7x
topology: tpu7x:2x2x1
jax: 0.10.0
libtpu: 0.0.40
codegen_flags: <defaults>
</compile_context>

<pallas_src>
import functools

import jax
import jax.numpy as jnp
from jax import lax
from jax.experimental import pallas as pl
from jax.experimental.pallas import tpu as pltpu


# ---------------------------------------------------------------------------
# Kernel bodies
# ---------------------------------------------------------------------------

def _sdpa_block(q, k, v, m, scale):
    """One (TQ, S) attention tile. Softmax math in f32, probabilities downcast once.

    q: (TQ, Dk), k: (S, Dk), v: (S, Dv), m: (1, S).
    Returns (out_f32 (TQ, Dv), attn_lowp (TQ, S) in q.dtype).
    """
    # Fold 1/sqrt(d_k) into q in the *input* dtype (keeps the matmul bf16 on v6e/v7x).
    qs = q * jnp.asarray(scale, q.dtype)

    # scores = (q*scale) @ k^T expressed as a contraction (no materialized k.T copy).
    scores = lax.dot_general(
        qs, k,
        dimension_numbers=(((1,), (1,)), ((), ())),
        preferred_element_type=jnp.float32,
    )                                                     # (TQ, S) f32

    # Additive mask bias computed once on the (1, S) row, broadcast over TQ.
    bias = jnp.where(m == 0, jnp.float32(-1e9), jnp.float32(0.0))
    scores = scores + bias

    # Numerically stable softmax along the key axis; exp reuses the scores buffer.
    scores_max = jnp.max(scores, axis=-1, keepdims=True)
    scores = jnp.exp(scores - scores_max)
    denom = jnp.sum(scores, axis=-1, keepdims=True)
    # Exact divide (attn is a user-visible output); downcast to the input dtype once and
    # reuse the low-precision probabilities for both the store and the attn@v matmul.
    attn = (scores / denom).astype(q.dtype)               # (TQ, S)

    out = jnp.dot(attn.astype(v.dtype), v, preferred_element_type=jnp.float32)
    return out, attn


def _attention_kernel(q_ref, k_ref, v_ref, mask_ref, out_ref, attn_ref, *, scale):
    # q_ref: (1,1,TQ,Dk)  k_ref: (1,1,S,Dk)  v_ref: (1,1,S,Dv)  mask_ref: (1,1,1,S)
    out, attn = _sdpa_block(q_ref[0, 0], k_ref[0, 0], v_ref[0, 0], mask_ref[0, 0], scale)
    attn_ref[0, 0] = attn.astype(attn_ref.dtype)
    out_ref[0, 0] = out.astype(out_ref.dtype)


def _attention_kernel_no_probs(q_ref, k_ref, v_ref, mask_ref, out_ref, *, scale):
    # Flash-style: never writes the (TQ, S) probabilities back to HBM.
    out, _ = _sdpa_block(q_ref[0, 0], k_ref[0, 0], v_ref[0, 0], mask_ref[0, 0], scale)
    out_ref[0, 0] = out.astype(out_ref.dtype)


# ---------------------------------------------------------------------------
# Tiling / VMEM sizing
# ---------------------------------------------------------------------------

def _vmem_capacity_bytes():
    try:
        cap = getattr(pltpu.get_tpu_info(), "vmem_capacity_bytes", None)
        if cap:
            return int(cap)
    except Exception:
        pass
    return 64 << 20  # conservative default (v7x per-TC VMEM)


def _pick_tq(seq_len, vmem_cap):
    """Query-tile size. Whole sequence for small S; otherwise a 128-multiple sized so a
    (TQ, S) f32 tile stays within a per-generation budget (~6 MiB on 128-MiB-VMEM parts,
    ~2 MiB / TQ<=256 on 64-MiB v7x)."""
    if seq_len <= 512 or seq_len % 128 != 0:
        return seq_len
    big_vmem = vmem_cap >= (96 << 20)          # v5e / v6e: 128 MiB, v7x: 64 MiB
    budget_bytes = (6 << 20) if big_vmem else (2 << 20)
    cap_tq = 1024 if big_vmem else 256
    tq = (budget_bytes // (seq_len * 4)) // 128 * 128
    tq = max(128, min(cap_tq, int(tq)))
    while seq_len % tq:
        tq -= 128
    return max(tq, 128)


def _vmem_limit_bytes(TQ, S, Dk, Dv, in_bytes, attn_bytes, vmem_cap, return_attn):
    kv = 2 * (S * Dk + S * Dv) * in_bytes                  # double-buffered K, V blocks
    qio = 2 * (TQ * Dk + TQ * Dv + S) * in_bytes           # q, out, mask (double-buffered)
    attn_out = (2 * TQ * S * attn_bytes) if return_attn else 0
    temps = 2 * TQ * S * 4                                  # live f32 (TQ,S) compute temps
    working_set = kv + qio + attn_out + temps
    limit = int(working_set * 1.5) + (8 << 20)              # headroom
    limit = min(limit, vmem_cap - (8 << 20))
    return max(32 << 20, limit)


# ---------------------------------------------------------------------------
# Wrapper
# ---------------------------------------------------------------------------

def attention(q, k, v, mask=None, *, return_attn=True):
    """Pallas TPU scaled dot-product attention (matches the PyTorch `Attention` module).

    q, k: (B, H, S, Dk); v: (B, H, S, Dv); mask: (B, 1, 1, S) or None.
    Returns (output (B, H, S, Dv), attn (B, H, S, S)) when return_attn=True,
    else just output (flash-style, no O(S^2) writeback).
    """
    assert q.shape[-1] == k.shape[-1]
    B, H, S, Dk = q.shape
    Dv = v.shape[-1]

    if mask is None:
        mask = jnp.ones((B, 1, 1, S), dtype=q.dtype)

    vmem_cap = _vmem_capacity_bytes()
    TQ = _pick_tq(S, vmem_cap)
    grid = (B, H, S // TQ)
    scale = 1.0 / float(Dk) ** 0.5
    attn_dtype = q.dtype  # torch.softmax preserves input dtype

    # TODO(synk): when Dv < 128, pack heads into a lane-dense (TQ, H*Dv) output slab to
    # avoid masked partial stores (layout plumbing only; correctness unaffected).

    q_spec = pl.BlockSpec((1, 1, TQ, Dk), lambda b, h, qi: (b, h, qi, 0))
    # K/V/mask blocks are identical across the query-tile axis -> stay resident, no re-DMA.
    k_spec = pl.BlockSpec((1, 1, S, Dk), lambda b, h, qi: (b, h, 0, 0))
    v_spec = pl.BlockSpec((1, 1, S, Dv), lambda b, h, qi: (b, h, 0, 0))
    m_spec = pl.BlockSpec((1, 1, 1, S), lambda b, h, qi: (b, 0, 0, 0))

    out_spec = pl.BlockSpec((1, 1, TQ, Dv), lambda b, h, qi: (b, h, qi, 0))

    in_bytes = jnp.dtype(q.dtype).itemsize
    attn_bytes = jnp.dtype(attn_dtype).itemsize
    vmem_limit = _vmem_limit_bytes(TQ, S, Dk, Dv, in_bytes, attn_bytes, vmem_cap, return_attn)

    compiler_params = pltpu.CompilerParams(
        # qi is "arbitrary" so v7x megacore shards over (b, h) and the resident K/V
        # blocks are not duplicated per core; near-zero impact on single-TC parts.
        dimension_semantics=("parallel", "parallel", "arbitrary"),
        vmem_limit_bytes=vmem_limit,
    )

    if return_attn:
        out_shapes = (
            jax.ShapeDtypeStruct((B, H, S, Dv), q.dtype),
            jax.ShapeDtypeStruct((B, H, S, S), attn_dtype),
        )
        attn_spec = pl.BlockSpec((1, 1, TQ, S), lambda b, h, qi: (b, h, qi, 0))
        return pl.pallas_call(
            functools.partial(_attention_kernel, scale=scale),
            out_shape=out_shapes,
            grid_spec=pltpu.PrefetchScalarGridSpec(
                num_scalar_prefetch=0,
                grid=grid,
                in_specs=[q_spec, k_spec, v_spec, m_spec],
                out_specs=[out_spec, attn_spec],
            ),
            compiler_params=compiler_params,
        )(q, k, v, mask)

    return pl.pallas_call(
        functools.partial(_attention_kernel_no_probs, scale=scale),
        out_shape=jax.ShapeDtypeStruct((B, H, S, Dv), q.dtype),
        grid_spec=pltpu.PrefetchScalarGridSpec(
            num_scalar_prefetch=0,
            grid=grid,
            in_specs=[q_spec, k_spec, v_spec, m_spec],
            out_specs=out_spec,
        ),
        compiler_params=compiler_params,
    )(q, k, v, mask)


# ---------------------------------------------------------------------------
# Reference + test
# ---------------------------------------------------------------------------

def _reference_attention(q, k, v, mask=None):
    d_k = q.shape[-1]
    scores = jnp.einsum("bhqd,bhkd->bhqk", q, k) / jnp.sqrt(jnp.float32(d_k))
    if mask is not None:
        scores = jnp.where(mask == 0, -1e9, scores)
    attn = jax.nn.softmax(scores, axis=-1)
    out = jnp.einsum("bhqk,bhkd->bhqd", attn, v)
    return out, attn


if __name__ == "__main__":
    key = jax.random.PRNGKey(0)
    kq, kk, kv, km = jax.random.split(key, 4)

    B, H, S, Dk, Dv = 2, 4, 8, 32, 32

    q = jax.random.normal(kq, (B, H, S, Dk), dtype=jnp.float32)
    k = jax.random.normal(kk, (B, H, S, Dk), dtype=jnp.float32)
    v = jax.random.normal(kv, (B, H, S, Dv), dtype=jnp.float32)
    # mask: (B, 1, 1, S), zero entries get masked out
    mask = (jax.random.uniform(km, (B, 1, 1, S)) > 0.2).astype(jnp.float32)

    out, attn = attention(q, k, v, mask)
    jax.block_until_ready((out, attn))

    out_only = attention(q, k, v, mask, return_attn=False)
    jax.block_until_ready(out_only)

    ref_out, ref_attn = _reference_attention(q, k, v, mask)
    assert out.shape == (B, H, S, Dv)
    assert attn.shape == (B, H, S, S)
    assert jnp.allclose(out, ref_out, atol=1e-3, rtol=1e-3)
    assert jnp.allclose(attn, ref_attn, atol=1e-3, rtol=1e-3)
    assert jnp.allclose(out_only, ref_out, atol=1e-3, rtol=1e-3)

    print("KERNEL_OK")
</pallas_src>

<mosaic_0001>
module attributes {stable_mosaic.version = 11 : i64} {
  func.func @_attention_kernel(%arg0: i32, %arg1: i32, %arg2: i32, %arg3: memref<1x1x8x32xf32, #tpu.memory_space<vmem>>, %arg4: memref<1x1x8x32xf32, #tpu.memory_space<vmem>>, %arg5: memref<1x1x8x32xf32, #tpu.memory_space<vmem>>, %arg6: memref<1x1x1x8xf32, #tpu.memory_space<vmem>>, %arg7: memref<1x1x8x32xf32, #tpu.memory_space<vmem>>, %arg8: memref<1x1x8x8xf32, #tpu.memory_space<vmem>>) attributes {dimension_semantics = [#tpu.dimension_semantics<parallel>, #tpu.dimension_semantics<parallel>, #tpu.dimension_semantics<arbitrary>], iteration_bounds = array<i64: 2, 4, 1>, scalar_prefetch = 0 : i64, scratch_operands = 0 : i64, tpu.core_type = #tpu.core_type<tc>, window_params = [{transform_indices = @transform_0, window_bounds = array<i64: 1, 1, 8, 32>}, {transform_indices = @transform_1, window_bounds = array<i64: 1, 1, 8, 32>}, {transform_indices = @transform_2, window_bounds = array<i64: 1, 1, 8, 32>}, {transform_indices = @transform_3, window_bounds = array<i64: 1, 1, 1, 8>}, {transform_indices = @transform_4, window_bounds = array<i64: 1, 1, 8, 32>}, {transform_indices = @transform_5, window_bounds = array<i64: 1, 1, 8, 8>}]} {
    %c0 = arith.constant 0 : index
    %c0_0 = arith.constant 0 : index
    %c0_1 = arith.constant 0 : index
    %c0_2 = arith.constant 0 : index
    %0 = vector.load %arg3[%c0, %c0_0, %c0_1, %c0_2] : memref<1x1x8x32xf32, #tpu.memory_space<vmem>>, vector<1x1x8x32xf32>
    %1 = vector.shape_cast %0 : vector<1x1x8x32xf32> to vector<8x32xf32>
    %c0_3 = arith.constant 0 : index
    %c0_4 = arith.constant 0 : index
    %c0_5 = arith.constant 0 : index
    %c0_6 = arith.constant 0 : index
    %2 = vector.load %arg4[%c0_3, %c0_4, %c0_5, %c0_6] : memref<1x1x8x32xf32, #tpu.memory_space<vmem>>, vector<1x1x8x32xf32>
    %3 = vector.shape_cast %2 : vector<1x1x8x32xf32> to vector<8x32xf32>
    %c0_7 = arith.constant 0 : index
    %c0_8 = arith.constant 0 : index
    %c0_9 = arith.constant 0 : index
    %c0_10 = arith.constant 0 : index
    %4 = vector.load %arg5[%c0_7, %c0_8, %c0_9, %c0_10] : memref<1x1x8x32xf32, #tpu.memory_space<vmem>>, vector<1x1x8x32xf32>
    %5 = vector.shape_cast %4 : vector<1x1x8x32xf32> to vector<8x32xf32>
    %c0_11 = arith.constant 0 : index
    %c0_12 = arith.constant 0 : index
    %c0_13 = arith.constant 0 : index
    %c0_14 = arith.constant 0 : index
    %6 = vector.load %arg6[%c0_11, %c0_12, %c0_13, %c0_14] : memref<1x1x1x8xf32, #tpu.memory_space<vmem>>, vector<1x1x1x8xf32>
    %7 = vector.shape_cast %6 : vector<1x1x1x8xf32> to vector<1x8xf32>
    %cst = arith.constant 0.176776692 : f32
    %8 = vector.broadcast %cst : f32 to vector<8x32xf32>
    %9 = arith.mulf %1, %8 : vector<8x32xf32>
    %cst_15 = arith.constant dense<0.000000e+00> : vector<8x8xf32>
    %10 = tpu.matmul %9, %3, %cst_15 {dimension_numbers = #tpu.dot_dimension_numbers<[1], [1], [0], [0], [0, 0, 1, 0], [], []>} : vector<8x32xf32>, vector<8x32xf32>, vector<8x8xf32> -> vector<8x8xf32>
    %cst_16 = arith.constant 0.000000e+00 : f32
    %11 = vector.broadcast %cst_16 : f32 to vector<1x8xf32>
    %12 = arith.cmpf oeq, %7, %11 : vector<1x8xf32>
    %cst_17 = arith.constant -1.000000e+09 : f32
    %cst_18 = arith.constant 0.000000e+00 : f32
    %13 = vector.broadcast %cst_17 : f32 to vector<1x8xf32>
    %14 = vector.broadcast %cst_18 : f32 to vector<1x8xf32>
    %15 = arith.select %12, %13, %14 : vector<1x8xi1>, vector<1x8xf32>
    %16 = vector.broadcast %15 : vector<1x8xf32> to vector<8x8xf32>
    %17 = arith.addf %10, %16 : vector<8x8xf32>
    %cst_19 = arith.constant dense<0xFF800000> : vector<8xf32>
    %18 = vector.multi_reduction <maximumf>, %17, %cst_19 [1] : vector<8x8xf32> to vector<8xf32>
    %19 = vector.shape_cast %18 : vector<8xf32> to vector<8x1xf32>
    %20 = vector.broadcast %19 : vector<8x1xf32> to vector<8x8xf32>
    %21 = arith.subf %17, %20 : vector<8x8xf32>
    %22 = math.exp %21 : vector<8x8xf32>
    %cst_20 = arith.constant dense<0.000000e+00> : vector<8xf32>
    %23 = vector.multi_reduction <add>, %22, %cst_20 [1] : vector<8x8xf32> to vector<8xf32>
    %24 = vector.shape_cast %23 : vector<8xf32> to vector<8x1xf32>
    %25 = vector.broadcast %24 : vector<8x1xf32> to vector<8x8xf32>
    %26 = arith.divf %22, %25 : vector<8x8xf32>
    %cst_21 = arith.constant dense<0.000000e+00> : vector<8x32xf32>
    %27 = tpu.matmul %26, %5, %cst_21 {dimension_numbers = #tpu.dot_dimension_numbers<[1], [0], [0], [1], [0, 0, 1, 1], [], []>} : vector<8x8xf32>, vector<8x32xf32>, vector<8x32xf32> -> vector<8x32xf32>
    %c0_22 = arith.constant 0 : index
    %c0_23 = arith.constant 0 : index
    %c0_24 = arith.constant 0 : index
    %c0_25 = arith.constant 0 : index
    %28 = vector.load %arg8[%c0_22, %c0_23, %c0_24, %c0_25] : memref<1x1x8x8xf32, #tpu.memory_space<vmem>>, vector<1x1x8x8xf32>
    %29 = vector.shape_cast %28 : vector<1x1x8x8xf32> to vector<8x8xf32>
    %30 = vector.shape_cast %26 : vector<8x8xf32> to vector<1x1x8x8xf32>
    tpu.vector_store %arg8[%c0_22, %c0_23, %c0_24, %c0_25], %30 {strides = array<i32>} : memref<1x1x8x8xf32, #tpu.memory_space<vmem>>, vector<1x1x8x8xf32>,
    %c0_26 = arith.constant 0 : index
    %c0_27 = arith.constant 0 : index
    %c0_28 = arith.constant 0 : index
    %c0_29 = arith.constant 0 : index
    %31 = vector.load %arg7[%c0_26, %c0_27, %c0_28, %c0_29] : memref<1x1x8x32xf32, #tpu.memory_space<vmem>>, vector<1x1x8x32xf32>
    %32 = vector.shape_cast %31 : vector<1x1x8x32xf32> to vector<8x32xf32>
    %33 = vector.shape_cast %27 : vector<8x32xf32> to vector<1x1x8x32xf32>
    tpu.vector_store %arg7[%c0_26, %c0_27, %c0_28, %c0_29], %33 {strides = array<i32>} : memref<1x1x8x32xf32, #tpu.memory_space<vmem>>, vector<1x1x8x32xf32>,
    return
  }
  func.func @transform_0(%arg0: i32, %arg1: i32, %arg2: i32) -> (i32, i32, i32, i32) {
    %c0_i32 = arith.constant 0 : i32
    %c0_i32_0 = arith.constant 0 : i32
    return %arg0, %arg1, %arg2, %c0_i32 : i32, i32, i32, i32
  }
  func.func @transform_1(%arg0: i32, %arg1: i32, %arg2: i32) -> (i32, i32, i32, i32) {
    %c0_i32 = arith.constant 0 : i32
    %c0_i32_0 = arith.constant 0 : i32
    %c0_i32_1 = arith.constant 0 : i32
    return %arg0, %arg1, %c0_i32, %c0_i32_0 : i32, i32, i32, i32
  }
  func.func @transform_2(%arg0: i32, %arg1: i32, %arg2: i32) -> (i32, i32, i32, i32) {
    %c0_i32 = arith.constant 0 : i32
    %c0_i32_0 = arith.constant 0 : i32
    %c0_i32_1 = arith.constant 0 : i32
    return %arg0, %arg1, %c0_i32, %c0_i32_0 : i32, i32, i32, i32
  }
  func.func @transform_3(%arg0: i32, %arg1: i32, %arg2: i32) -> (i32, i32, i32, i32) {
    %c0_i32 = arith.constant 0 : i32
    %c0_i32_0 = arith.constant 0 : i32
    %c0_i32_1 = arith.constant 0 : i32
    %c0_i32_2 = arith.constant 0 : i32
    return %arg0, %c0_i32, %c0_i32_0, %c0_i32_1 : i32, i32, i32, i32
  }
  func.func @transform_4(%arg0: i32, %arg1: i32, %arg2: i32) -> (i32, i32, i32, i32) {
    %c0_i32 = arith.constant 0 : i32
    %c0_i32_0 = arith.constant 0 : i32
    return %arg0, %arg1, %arg2, %c0_i32 : i32, i32, i32, i32
  }
  func.func @transform_5(%arg0: i32, %arg1: i32, %arg2: i32) -> (i32, i32, i32, i32) {
    %c0_i32 = arith.constant 0 : i32
    %c0_i32_0 = arith.constant 0 : i32
    return %arg0, %arg1, %arg2, %c0_i32 : i32, i32, i32, i32
  }
}

</mosaic_0001>

<bundles_post_ra>
// kernel: tpu_custom_call.1
= control target key start
LH: loop header
LB: loop body
LE: loop exit
PB: predicated region body
PF: predicated region fallthrough
CT: control target
= control target key end

     0   :  { %s1509_s0 = inlined_call_operand.hbm [shape: f32[2,4,8,32], index: 0, kind: input, shape index: {}]   ;;  %s1510_s1 = inlined_call_operand.hbm [shape: f32[2,4,8,32], index: 1, kind: input, shape index: {}]   ;;  %s1511_s2 = inlined_call_operand.hbm [shape: f32[2,4,8,32], index: 2, kind: input, shape index: {}]   ;;  %s1512_s3 = inlined_call_operand.vmem [shape: f32[2,1,1,8], index: 3, kind: input, shape index: {}]   ;;  %s1513_s4 = inlined_call_operand.hbm [shape: f32[2,4,8,32], index: 4, kind: output, shape index: {0}]   ;;  %s1514_s5 = inlined_call_operand.hbm [shape: f32[2,4,8,8], index: 5, kind: output, shape index: {1}]  }
   0x1   :  { %1527 = sst [smem:[#allocation23_spill]] %s1510_s1 }
   0x2   :  { %11 = vsyncpa [#allocation3], 0 }
   0x3   :  { %13 = vsyncpa [#allocation3 + $0x1], 0 }
   0x4   :  { %14 = vsyncpa [#allocation6], 0 }
   0x5   :  { %16 = vsyncpa [#allocation6 + $0x1], 0 }
   0x6   :  { %17 = vsyncpa [#allocation4], 0 }
   0x7   :  { %19 = vsyncpa [#allocation4 + $0x1], 0 }
   0x8   :  { %20 = vsyncpa [#allocation10], 0 }
   0x9   :  { %22 = vsyncpa [#allocation10 + $0x1], 0  ;;  %s1180_s18 = smov 0   ;;  %s1182_s19 = smov 0  }
   0xa   :  { %s1184_s20 = smov 0   ;;  %s1186_s21 = smov 0  }
   0xb   :  { %s1188_s22 = smov 0   ;;  %s1190_s23 = smov 0  }
   0xc   :  { %s1192_s24 = smov 0   ;;  %s1194_s25 = smov 0  }
   0xd LB: > { %1528 = sst [smem:[#allocation15_spill]] %s1113_s18  ;;  %s1221_s26 = sadd.s32 4294967295, %s1141_s25   ;;  %s1141_s25 = sphi %s1194_s25, %s28_s25   ;;  %s1137_s24 = sphi %s1192_s24, %s1559_s24   ;;  %s1133_s23 = sphi %s1190_s23, %s1558_s23   ;;  %s1129_s22 = sphi %s1188_s22, %s1557_s22   ;;  %s1125_s21 = sphi %s1186_s21, %s1556_s21   ;;  %s1121_s20 = sphi %s1184_s20, %s1562_s20   ;;  %s1117_s19 = sphi %s1182_s19, %s1561_s19   ;;  %s1113_s18 = sphi %s1180_s18, %s1560_s18  }
   0xe   : > { %1529 = sst [smem:[#allocation16_spill]] %s1133_s23  ;;  %s775_s27 = sadd.s32 4294967294, %s1141_s25  }
   0xf   : > { %1530 = sst [smem:[#allocation17_spill]] %s1137_s24  ;;  %s43_s28 = sadd.s32 1, %s1133_s23 }
  0x10   : > { %1531 = sst [smem:[#allocation18_spill]] %s1141_s25  ;;  %s47_s29 = sadd.s32 1, %s1137_s24 }
  0x11   : > { %p45_p0 = scmp.ge.s32.totalorder %s43_s28, 4  ;;  %s58_s30 = sadd.s32 1, %s1121_s20 }
  0x12   : > { %p65_p1 = scmp.ne.s32.totalorder %s1121_s20, %s1117_s19  ;;  %p66_p2 = scmp.eq.s32.totalorder %s1141_s25, 0 }
  0x13   : > { %s1564_s28 = smov (%p45_p0, %s43_s28), 0  ;;  %s1566_s29 = smov (!%p45_p0, %s47_s29), %s1137_s24 }
  0x14   : > { %1532 = sst [smem:[#allocation19_spill]] %s1564_s28  ;;  %s52_s6 = ssub.s32 %s1133_s23, %s1564_s28 }
  0x15   : > { %p1235_p3 = por %p66_p2, %p65_p1  ;;  %p49_p4 = scmp.ge.s32.totalorder %s1566_s29, 2 }
  0x16   : > { %p71_p5 = scmp.ne.s32.totalorder %s1117_s19, %s1113_s18  ;;  %p72_p6 = scmp.eq.s32.totalorder %s1221_s26, 0 }
  0x17   : > { %p181_p7 = scmp.eq.s32.totalorder %s1221_s26, 7  ;;  %s1568_s29 = smov (%p49_p4, %s1566_s29), 0 }
  0x18   : > { %1534 = sst [smem:[#allocation20_spill]] %s1568_s29  ;;  %p1245_p8 = por %p72_p6, %p71_p5 }
  0x19   : > { %p1249_p9 = por %p181_p7, %p65_p1  ;;  %s51_s10 = ssub.s32 %s1137_s24, %s1568_s29 }
  0x1a   : > { %s1535_s8 = scalar_select %p1245_p8, 1, 0 }
  0x1b   : > { %s1536_s9 = scalar_select %p1249_p9, 1, 0 }
  0x1c   : > { %p187_p10 = scmp.eq.s32.totalorder %s775_s27, 7  ;;  %s53_s11 = sor.u32 %s52_s6, %s51_s10 }
  0x1d   : > { %p56_p11 = scmp.eq.s32.totalorder %s53_s11, 0  ;;  %p845_p13 = scmp.lt.s32.totalorder %s1141_s25, 8 }
  0x1e   : > { %p1255_p12 = por %p187_p10, %p71_p5  ;;  %s1516_s13 = sand.u32 1, %s1121_s20  }
  0x1f   : > { %s1262_s14 = scalar_select %p56_p11, %s1121_s20, %s58_s30  }
  0x20   : > { %s1537_s12 = scalar_select %p1255_p12, 1, 0 }
  0x21   : > { %1539 = sst [smem:[#allocation22_spill]] %s1262_s14  ;;  %s1266_s15 = sshll.u32 %s1516_s13, 3 }
  0x22   : > { %1538 = sst [smem:[#allocation21_spill]] %s1537_s12  ;;  %s779_s16 = sshll.u32 %s1137_s24, 2 }
  0x23   : > { %s247_s17 = sadd.s32 %s1133_s23, %s779_s16  ;;  %p1272_p0 = pnand %p845_p13, %p1235_p3 }
  0x24   : > { %s1276_s6 = sshll.u32 %s247_s17, 7  ;;  %s258_s10 = sand.u32 1, %s1141_s25  }
  0x25   : > { %s1540_s27 = scalar_select %p1272_p0, 1, 0 }
  0x26   : > { %s1541_s1 = sld [smem:[#allocation23_spill]]  ;;  %s262_s16 = scalar_lea.vmem [#allocation5], %s1266_s15 }
  0x27   : > { %s271_s7 = sshll.u32 %s262_s16, 4  ;;  %s1290_s13 = scalar_lea.sflag [#allocation6], %s258_s10  ;;  %s1287_s7 = int_to_ptr.vmem [resolvable:$true] %s271_s7 }
  0x28   : > { %p1296_p4 = pneg %p1272_p0 }
  0x2c   : > { %s1283_s30 = scalar_lea.hbm %s1541_s1, %s1276_s6  ;;  %s922_s16 = scalar_lea.hbm %s1541_s1, 1024 }
  0x2d   : > { %s917_s17 = scalar_lea.hbm %s1283_s30, 128  ;;  %p923_p7 = scmp.lt.u32.totalorder %s1283_s30, %s1541_s1 }
  0x2e   : > { %p918_p3 = scmp.ne.s32.totalorder %s1283_s30, %s917_s17  ;;  %p924_p10 = scmp.lt.u32.totalorder %s922_s16, %s917_s17 }
  0x2f   : > { %p926_p13 = scmp.lt.u32.totalorder %s917_s17, %s1283_s30 }
  0x30   : > { %p920_p5 = pnand %p1296_p4, %p918_p3  ;;  %p925_p11 = por %p924_p10, %p923_p7 }
  0x32   : > { %p921_p6 = pneg %p920_p5  ;;  %p927_p1 = por %p926_p13, %p925_p11 }
  0x34   : > { %p928_p2 = pnand %p927_p1, %p921_p6 }
  0x36   : > { %931 = shalt.err (!%p928_p2)
}
  0x37   : > { %s932_s10 = scalar_lea.vmem %s1287_s7, 128  ;;  %s1143_s29 = smov [#allocation5]  }
  0x38   : > { %p933_p3 = scmp.ne.s32.totalorder %s1287_s7, %s932_s10  ;;  %s937_s11 = sshll.u32 %s1143_s29, 4  ;;  %s938_s11 = int_to_ptr.vmem [resolvable:$false] %s937_s11 }
  0x39   : > { %s939_s23 = scalar_lea.vmem %s938_s11, 256  ;;  %p940_p9 = scmp.lt.s32.totalorder %s1287_s7, %s938_s11 }
  0x3a   : > { %p935_p5 = pnand %p933_p3, %p1296_p4  ;;  %p941_p8 = scmp.lt.s32.totalorder %s939_s23, %s932_s10 }
  0x3c   : > { %p936_p12 = pneg %p935_p5  ;;  %p942_p7 = por %p941_p8, %p940_p9 }
  0x3e   : > { %p943_p10 = pnand %p942_p7, %p936_p12 }
  0x40   : > { %946 = shalt.err (!%p943_p10)
}
  0x41   : > { %834 = dma.hbm_to_vmem [thread:$0]  (!%p1272_p0), %s1283_s30, 128, %s1287_s7, %s1290_s13  }
  0x42   : > { %p1543_p1 = scmp.lt.s32.totalorder %s1141_s25, 9  ;;  %p1544_p2 = scmp.ge.s32.totalorder %s1141_s25, 1 }
  0x43   : > { %s1332_s10 = scalar_lea.hbm %s1509_s0, %s1276_s6  ;;  %s241_s29 = scalar_lea.vmem [#allocation2], %s1266_s15 }
  0x44   : > { %p1324_p6 = pnand %p1544_p2, %p1543_p1  ;;  %s251_s11 = sshll.u32 %s241_s29, 4  ;;  %s1335_s11 = int_to_ptr.vmem [resolvable:$true] %s251_s11 }
  0x45   : > { %s1341_s23 = scalar_lea.hbm %s1511_s2, %s1276_s6  ;;  %s1546_s1 = sand.u32 1, %s1121_s20  }
  0x46   : > { %s1545_s24 = scalar_select %p1324_p6, 1, 0 }
  0x47   : > { %s238_s14 = scalar_lea.sflag [#allocation3], %s1546_s1  ;;  %s947_s12 = scalar_lea.hbm %s1332_s10, 128 }
  0x48   : > { %p948_p8 = scmp.ne.s32.totalorder %s1332_s10, %s947_s12  ;;  %s952_s18 = scalar_lea.hbm %s1509_s0, 1024 }
  0x49   : > { %p953_p11 = scmp.lt.u32.totalorder %s1332_s10, %s1509_s0  ;;  %p954_p13 = scmp.lt.u32.totalorder %s952_s18, %s947_s12 }
  0x4a   : > { %p950_p9 = pnand %p948_p8, %p1296_p4  ;;  %p956_p5 = scmp.lt.u32.totalorder %s947_s12, %s1332_s10 }
  0x4b   : > { %p955_p3 = por %p954_p13, %p953_p11 }
  0x4c   : > { %p951_p12 = pneg %p950_p9 }
  0x4d   : > { %p957_p7 = por %p956_p5, %p955_p3 }
  0x4f   : > { %p958_p10 = pnand %p957_p7, %p951_p12 }
  0x51   : > { %961 = shalt.err (!%p958_p10)
}
  0x52   : > { %s962_s1 = scalar_lea.vmem %s1335_s11, 128  ;;  %s1144_s6 = smov [#allocation2]  }
  0x53   : > { %p963_p1 = scmp.ne.s32.totalorder %s1335_s11, %s962_s1  ;;  %s967_s30 = sshll.u32 %s1144_s6, 4  ;;  %s968_s30 = int_to_ptr.vmem [resolvable:$false] %s967_s30 }
  0x54   : > { %s969_s25 = scalar_lea.vmem %s968_s30, 256  ;;  %p970_p9 = scmp.lt.s32.totalorder %s1335_s11, %s968_s30 }
  0x55   : > { %p965_p2 = pnand %p963_p1, %p1296_p4  ;;  %p971_p6 = scmp.lt.s32.totalorder %s969_s25, %s962_s1 }
  0x57   : > { %p966_p8 = pneg %p965_p2  ;;  %p972_p11 = por %p971_p6, %p970_p9 }
  0x59   : > { %p973_p13 = pnand %p972_p11, %p966_p8 }
  0x5b   : > { %976 = shalt.err (!%p973_p13)
}
  0x5c   : > { %831 = dma.hbm_to_vmem [thread:$0]  (!%p1272_p0), %s1332_s10, 128, %s1335_s11, %s238_s14  }
  0x5d   : > { %s282_s18 = scalar_lea.vmem [#allocation7], %s1266_s15  ;;  %s977_s7 = scalar_lea.hbm %s1341_s23, 128 }
  0x5e   : > { %s291_s12 = sshll.u32 %s282_s18, 4  ;;  %p978_p12 = scmp.ne.s32.totalorder %s1341_s23, %s977_s7  ;;  %s292_s12 = int_to_ptr.vmem [resolvable:$true] %s291_s12 }
  0x5f   : > { %s982_s29 = scalar_lea.hbm %s1511_s2, 1024  ;;  %p983_p5 = scmp.lt.u32.totalorder %s1341_s23, %s1511_s2 }
  0x60   : > { %p980_p6 = pnand %p978_p12, %p1296_p4  ;;  %p984_p7 = scmp.lt.u32.totalorder %s982_s29, %s977_s7 }
  0x61   : > { %p986_p1 = scmp.lt.u32.totalorder %s977_s7, %s1341_s23 }
  0x62   : > { %p981_p3 = pneg %p980_p6  ;;  %p985_p10 = por %p984_p7, %p983_p5 }
  0x64   : > { %p987_p2 = por %p986_p1, %p985_p10 }
  0x66   : > { %p988_p8 = pnand %p987_p2, %p981_p3 }
  0x68   : > { %991 = shalt.err (!%p988_p8)
}
  0x69   : > { %s992_s14 = scalar_lea.vmem %s292_s12, 128  ;;  %s1145_s15 = smov [#allocation7]  }
  0x6a   : > { %p993_p9 = scmp.ne.s32.totalorder %s292_s12, %s992_s14  ;;  %s997_s10 = sshll.u32 %s1145_s15, 4  ;;  %s998_s10 = int_to_ptr.vmem [resolvable:$false] %s997_s10 }
  0x6b   : > { %s999_s11 = scalar_lea.vmem %s998_s10, 256  ;;  %p1000_p12 = scmp.lt.s32.totalorder %s292_s12, %s998_s10 }
  0x6c   : > { %p995_p11 = pnand %p993_p9, %p1296_p4  ;;  %p1001_p6 = scmp.lt.s32.totalorder %s999_s11, %s992_s14 }
  0x6e   : > { %p996_p13 = pneg %p995_p11  ;;  %p1002_p0 = por %p1001_p6, %p1000_p12 }
  0x70   : > { %p1003_p5 = pnand %p1002_p0, %p996_p13 }
  0x72   : > { %1006 = shalt.err (!%p1003_p5)
}
  0x73   : > { %p1547_p7 = scmp.ne.s32.totalorder %s1540_s27, 0  ;;  %p1548_p3 = scmp.ne.s32.totalorder %s1545_s24, 0 }
  0x74   : > { %s1388_s28 = sand.u32 (!%p1548_p3), 1, %s1117_s19   ;;  %p1549_p0 = scmp.ne.s32.totalorder (!%p1548_p3), %s1535_s8, 0 }
  0x75   : > { %837 = dma.hbm_to_vmem [thread:$0]  (!%p1547_p7), %s1341_s23, 128, %s292_s12, %s1290_s13  }
  0x76   : > { %306 = sbr.rel (%p1548_p3) target bundleno = 889 (0x379), region = 36  ;;  %s1391_s30 = sshll.u32 (!%p1548_p3), %s1388_s28, 3 }
  0x77   : > { %s309_s25 = scalar_lea.sflag (!%p1548_p3), [#allocation3], %s1388_s28  ;;  %s312_s18 = scalar_lea.vmem (!%p1548_p3), [#allocation2], %s1391_s30 }
  0x7d   : > { %1096 = dma.done.wait (%p1549_p0), %s309_s25, 128  }
  0x7e   : > { %1098 = vsyncadd (%p1549_p0), %s309_s25, 4294967168  ;;  %s317_s13 = sand.u32 1, %s1221_s26   ;;  %s321_s24 = scalar_lea.vmem [#allocation5], %s1391_s30 }
  0x7f   : > { %s318_s27 = scalar_lea.sflag [#allocation6], %s317_s13 }
  0x80   : > { %1100 = dma.done.wait (%p1549_p0), %s318_s27, 256  }
  0x81   : > { %1102 = vsyncadd (%p1549_p0), %s318_s27, 4294967040  ;;  %v1146_v0 = vmov 0.0   ;;  %vm1147_vm0 = vmmov 0   ;;  %vm391_vm1 = vcmask 261120   ;;  %v379_v1 = vld [vmem:[%s321_s24] sm:$0xff]  ;;  %v378_v2 = vld [vmem:[%s312_s18] sm:$0xff]  ;;  %v386_v4 = vlaneseq }
  0x82   : > { %808 = vmatprep.subr.mxu0 %v1146_v0  ;;  %810 = vmatprep.mubr.msk.f32.mxu0 %vm1147_vm0, %v1146_v0  ;;  %v382_v3 = vmul.f32 0.17677669, %v378_v2  ;;  %p375_p4 = scmp.lt.s32.totalorder %s1129_s22, 1  ;;  %vm468_vm3 = vcmask 64512   ;;  %s330_s7 = scalar_lea.vmem [#allocation7], %s1391_s30 }
  0x83   : > { %813 = vmatprep.subr.mxu1 %v1146_v0  ;;  %815 = vmatprep.mubr.msk.f32.mxu1 %vm1147_vm0, %v1146_v0  ;;  %v387_v6 = vshrl.u32 %v386_v4, 7  ;;  %v380_v19 = vld [vmem:[%s330_s7] sm:$0xff]  ;;  %s374_s17 = scalar_lea.vmem [#allocation9], %s1391_s30  ;;  %s798_s16 = sshll.u32 %s1129_s22, 2 }
  0x84   : > { %809 = vmatpush3.xpose.msk.msra.mxu0 %vm391_vm1, %v379_v1  ;;  %s376_s26 = scalar_select %p375_p4, %s1129_s22, 1  ;;  %814 = vmatpush3.msra.mxu1 %v380_v19 }
  0x85   : > { %v388_v7 = vsub.s32 0, %v387_v6  ;;  %s1420_s29 = sadd.s32 %s1125_s21, %s798_s16  ;;  %s593_s10 = sshll.u32 %s374_s17, 4  ;;  %s594_s10 = int_to_ptr.vmem [resolvable:$true] %s593_s10 }
  0x86   : > { %s377_s12 = scalar_lea.vmem %s1512_s3, %s376_s26  ;;  %s799_s1 = sshll.u32 %s1420_s29, 7 }
  0x87   : > { %811 = vmatmul.mubr.msk.f32.vlgmr.msra.gmra.mrb[0].mxu0 %vm391_vm1, %v382_v3  ;;  %v381_v5 = vld [vmem:[%s377_s12] sm:$0x1]  ;;  %s1428_s15 = scalar_lea.hbm %s1514_s5, %s799_s1  ;;  %s561_s11 = scalar_lea.sflag [#allocation10], %s1388_s28 }
  0x88   : > { %vm383_vm2 = vcmp.eq.f32.partialorder %v381_v5, 0.0  ;;  %s1007_s25 = scalar_lea.vmem %s594_s10, 128  ;;  %p1550_p1 = scmp.ne.s32.totalorder %s1536_s9, 0 }
  0x89   : > { %v384_v8 = vsel %vm383_vm2, -1e+09, %v1146_v0  ;;  %p1008_p10 = scmp.ne.s32.totalorder %s594_s10, %s1007_s25  ;;  %s1148_s22 = smov [#allocation9]  }
  0x8a   : > { %v389_v9 = vrot.slane %v384_v8, %v388_v7  ;;  %s1011_s21 = sshll.u32 %s1148_s22, 4  ;;  %s1012_s21 = int_to_ptr.vmem [resolvable:$false] %s1011_s21 }
  0x8b   : > { %p1009_p2 = pnand %p1008_p10, %p1550_p1  ;;  %s1013_s18 = scalar_lea.vmem %s1012_s21, 256 }
  0x8c   : > { %p1014_p9 = scmp.lt.s32.totalorder %s594_s10, %s1012_s21  ;;  %p1015_p11 = scmp.lt.s32.totalorder %s1013_s18, %s1007_s25 }
  0x8d   : > { %p1010_p8 = pneg %p1009_p2 }
  0x8e   : > { %p1016_p13 = por %p1015_p11, %p1014_p9 }
  0x90   : > { %p1017_p12 = pnand %p1016_p13, %p1010_p8 }
 0x15a   : > { %v464_v10 = vpop.f32.mrb[0].mxu0 }
 0x15b   : > { %v465_v11 = vadd.f32 %v464_v10, %v389_v9  ;;  %v812_v12 = vpop.f32.mrb[1].mxu0 }
 0x15d   : > { %v469_v13 = vsel %vm468_vm3, %v465_v11, -inf }
 0x15e   : > { %470 = vmax.xlane.f32.xlu0 %v469_v13 }
 0x1eb   : > { %v471_v14 = vpop.xlane.xlu0 %470 }
 0x1ec   : > { %v472_v15 = vsub.f32 %v465_v11, %v471_v14 }
 0x1ee   : > { %v473_v16 = vmul.f32 1.442695, %v472_v15 }
 0x1f0   : > { %913 = vpow2.f32 %v473_v16 }
 0x1fa   : > { %v914_v17 = vpop.eup %913 }
 0x1fb   : > { %v475_v18 = vsel %vm468_vm3, %v914_v17, 0.0 }
 0x1fc   : > { %476 = vadd.xlane.f32.xlu0 %v475_v18 }
 0x289   : > { %v477_v20 = vpop.xlane.xlu0 %476 }
 0x28a   : > { %915 = vrcp.f32 %v477_v20 }
 0x294   : > { %v916_v21 = vpop.eup %915 }
 0x295   : > { %v479_v22 = vmul.f32 %v916_v21, %v914_v17 }
 0x297   : > { %816 = vmatmul.mubr.msk.f32.vlgmr.msra.gmra.mrb[0].mxu1 %vm468_vm3, %v479_v22  ;;  %553 = vst.msk [vmem:[%s374_s17] sm:$0xff] %vm468_vm3, %v479_v22 }
 0x298   : > { %1020 = shalt.err (!%p1017_p12)
}
 0x299   : > { %s1021_s13 = scalar_lea.hbm %s1428_s15, 128  ;;  %s1025_s26 = scalar_lea.hbm %s1514_s5, 1024 }
 0x29a   : > { %p1022_p6 = scmp.ne.s32.totalorder %s1428_s15, %s1021_s13  ;;  %p1026_p3 = scmp.lt.u32.totalorder %s1428_s15, %s1514_s5 }
 0x29b   : > { %p1027_p0 = scmp.lt.u32.totalorder %s1025_s26, %s1021_s13  ;;  %p1029_p10 = scmp.lt.u32.totalorder %s1021_s13, %s1428_s15 }
 0x29c   : > { %p1023_p5 = pnand %p1022_p6, %p1550_p1 }
 0x29d   : > { %p1028_p4 = por %p1027_p0, %p1026_p3 }
 0x29e   : > { %p1024_p7 = pneg %p1023_p5 }
 0x29f   : > { %p1030_p2 = por %p1029_p10, %p1028_p4 }
 0x2a1   : > { %p1031_p8 = pnand %p1030_p2, %p1024_p7 }
 0x2a3   : > { %1034 = shalt.err (!%p1031_p8)
}
 0x2a4   : > { %825 = dma.vmem_to_hbm [thread:$0]  (%p1550_p1), %s594_s10, 128, %s1428_s15, %s561_s11  }
 0x2a5   : > { %s367_s12 = scalar_lea.vmem [#allocation8], %s1391_s30  ;;  %s1454_s6 = scalar_lea.hbm %s1513_s4, %s799_s1 }
 0x2a6   : > { %s577_s7 = sshll.u32 %s367_s12, 4  ;;  %s556_s14 = scalar_lea.sflag [#allocation4], %s1388_s28  ;;  %s1456_s7 = int_to_ptr.vmem [resolvable:$true] %s577_s7 }
 0x2a7   : > { %s1035_s25 = scalar_lea.vmem %s1456_s7, 128  ;;  %s1149_s30 = smov [#allocation8]  }
 0x2a8   : > { %p1036_p9 = scmp.ne.s32.totalorder %s1456_s7, %s1035_s25  ;;  %s1039_s29 = sshll.u32 %s1149_s30, 4  ;;  %s1040_s29 = int_to_ptr.vmem [resolvable:$false] %s1039_s29 }
 0x2a9   : > { %s1041_s1 = scalar_lea.vmem %s1040_s29, 256  ;;  %p1042_p12 = scmp.lt.s32.totalorder %s1456_s7, %s1040_s29 }
 0x2aa   : > { %p1037_p11 = pnand %p1036_p9, %p1550_p1  ;;  %p1043_p6 = scmp.lt.s32.totalorder %s1041_s1, %s1035_s25 }
 0x2ac   : > { %p1038_p13 = pneg %p1037_p11  ;;  %p1044_p5 = por %p1043_p6, %p1042_p12 }
 0x2ae   : > { %p1045_p7 = pnand %p1044_p5, %p1038_p13 }
 0x36a   : > { %v549_v23 = vpop.f32.mrb[0].mxu1 }
 0x36b   : > { %554 = vst.msk [vmem:[%s367_s12] sm:$0xff] %vm391_vm1, %v549_v23  ;;  %v817_v24 = vpop.f32.mrb[1].mxu1 }
 0x36c   : > { %1048 = shalt.err (!%p1045_p7)
}
 0x36d   : > { %s1049_s28 = scalar_lea.hbm %s1454_s6, 128  ;;  %s1053_s11 = scalar_lea.hbm %s1513_s4, 1024 }
 0x36e   : > { %p1050_p3 = scmp.ne.s32.totalorder %s1454_s6, %s1049_s28  ;;  %p1054_p10 = scmp.lt.u32.totalorder %s1454_s6, %s1513_s4 }
 0x36f   : > { %p1055_p2 = scmp.lt.u32.totalorder %s1053_s11, %s1049_s28  ;;  %p1057_p9 = scmp.lt.u32.totalorder %s1049_s28, %s1454_s6 }
 0x370   : > { %p1051_p0 = pnand %p1050_p3, %p1550_p1 }
 0x371   : > { %p1056_p8 = por %p1055_p2, %p1054_p10 }
 0x372   : > { %p1052_p4 = pneg %p1051_p0 }
 0x373   : > { %p1058_p11 = por %p1057_p9, %p1056_p8 }
 0x375   : > { %p1059_p13 = pnand %p1058_p11, %p1052_p4 }
 0x377   : > { %1062 = shalt.err (!%p1059_p13)
}
 0x378   : > { %824 = dma.vmem_to_hbm [thread:$0]  (%p1550_p1), %s1456_s7, 128, %s1454_s6, %s556_s14  }
 0x379 PF: > { %s1551_s18 = sld [smem:[#allocation18_spill]]  ;;  %s1552_s13 = sld [smem:[#allocation15_spill]] }
 0x37a   : > { %s1553_s27 = sld [smem:[#allocation21_spill]] }
 0x37f   : > { %p846_p12 = scmp.ge.s32.totalorder %s1551_s18, 2  ;;  %s605_s24 = sand.u32 1, %s1552_s13  }
 0x380   : > { %p1554_p6 = scmp.ne.s32.totalorder %s1553_s27, 0  ;;  %s606_s26 = scalar_lea.sflag [#allocation4], %s605_s24 }
 0x382   : > { %p839_p5 = pnand %p846_p12, %p1554_p6 }
 0x384   : > { %1104 = dma.done.wait (!%p839_p5), %s606_s26, 128  }
 0x385   : > { %1106 = vsyncadd (!%p839_p5), %s606_s26, 4294967168  ;;  %s615_s8 = scalar_lea.sflag [#allocation10], %s605_s24 }
 0x386   : > { %1108 = dma.done.wait (!%p839_p5), %s615_s8, 128  }
 0x387   : > { %1110 = vsyncadd (!%p839_p5), %s615_s8, 4294967168  ;;  %s28_s25 = sadd.s32 1, %s1551_s18   ;;  %s1555_s9 = sld [smem:[#allocation22_spill]] }
 0x388   : > { %p25_p7 = scmp.ge.s32.totalorder %s28_s25, 10   ;;  %s1556_s21 = sld [smem:[#allocation16_spill]] }
 0x389   : > { %s1557_s22 = sld [smem:[#allocation17_spill]]  ;;  %s1558_s23 = sld [smem:[#allocation19_spill]] }
 0x38a   : > { %s1559_s24 = sld [smem:[#allocation20_spill]]  ;;  %s1560_s18 = smov %s1117_s19 }
 0x38b   : > { %s1561_s19 = smov %s1121_s20  ;;  %27 = sbr.rel (!%p25_p7) target bundleno = 13 (0xd), region = 125 }
 0x38d   : > { %s1562_s20 = smov %s1555_s9 }
 0x392   :  { %620 = vsyncpa [#allocation3], 1 }
 0x393   :  { %622 = vsyncpa [#allocation3 + $0x1], 1 }
 0x394   :  { %623 = vsyncpa [#allocation6], 1 }
 0x395   :  { %625 = vsyncpa [#allocation6 + $0x1], 1 }
 0x396   :  { %626 = vsyncpa [#allocation4], 1 }
 0x397   :  { %628 = vsyncpa [#allocation4 + $0x1], 1 }
 0x398   :  { %629 = vsyncpa [#allocation10], 1 }
 0x399   :  { %631 = vsyncpa [#allocation10 + $0x1], 1 }

</bundles_post_ra>
